<compile_context>
chip_gen: v5e
topology: v5e:2x2
jax: 0.10.0
libtpu: 0.0.40
codegen_flags: <defaults>
</compile_context>

<pallas_src>
import functools
import math

import jax
import jax.numpy as jnp
import numpy as np
from jax import lax
from jax.experimental import pallas as pl
from jax.experimental.pallas import tpu as pltpu


_CONTRACT_LAST = (((1,), (1,)), ((), ()))   # x @ y.T (contract the feature dim)


def _poincare_z(xy, xx_col, yy_row, c):
    """z such that dist(x, y) = (1/sqrt(c)) * log((1+z)/(1-z))  (hyptorch pmath).

    xy     : (M, N) pairwise inner products <x_i, y_j>
    xx_col : (M, 1) squared row norms of x
    yy_row : (1, N) squared row norms of y
    """
    sqrt_c = math.sqrt(c)
    a_coef = 1.0 - 2.0 * c * xy + c * yy_row                       # (M, N)
    b_coef = 1.0 - c * xx_col                                      # (M, 1)
    # ||(1 - 2c<x,y> + c|y|^2)(-x) + (1 - c|x|^2) y||^2 from Gram + norms only.
    num_sq = (a_coef * a_coef) * xx_col \
             - 2.0 * (a_coef * b_coef) * xy \
             + (b_coef * b_coef) * yy_row
    num_sq = jnp.maximum(num_sq, 0.0)
    denom = 1.0 - 2.0 * c * xy + (c * c) * xx_col * yy_row + 1e-5
    z = sqrt_c * jnp.sqrt(num_sq) / denom
    return jnp.clip(z, 0.0, 1.0 - 1e-5)                            # artanh clamp


def _hyp_triplet_kernel(a_ref, p_ref, n_ref, out_ref, *, margin, alpha, hyp_c):
    """Entire HypTripletLoss forward for one batch of triplets.

    a_ref / p_ref / n_ref : (B, D) f32 VMEM (unpadded)
    out_ref               : (1, 1) f32 VMEM scalar loss
    """
    f32 = jnp.float32
    a = a_ref[...]
    p = p_ref[...]
    n = n_ref[...]
    b, d = a.shape

    ones_blk = jnp.ones((8, d), f32)

    def _row_reduce(x):
        # sum over the feature dim, result as a lane-major (1, B) row (MXU).
        return lax.dot_general(ones_blk, x, _CONTRACT_LAST,
                               preferred_element_type=f32)[0:1, :]

    # ---- cosine regularizer: sum_i cos(n_i - a_i, p_i - a_i) ----
    da = n - a
    dpv = p - a
    cross = _row_reduce(da * dpv)                                  # (1, B)
    nda = _row_reduce(da * da)                                     # (1, B)
    ndp = _row_reduce(dpv * dpv)                                   # (1, B)
    # Single sqrt of the norm product; eps handling matches the reference
    # (differs from PyTorch's per-norm clamp only for degenerate triplets).
    cos = cross / jnp.maximum(jnp.sqrt(nda * ndp), 1e-6)
    cos_reg = jnp.sum(cos, keepdims=True)                          # (1, 1)

    if hyp_c == 0.0:
        # dist_pos - dist_neg == a @ (p - n).T : one MXU call, half the FLOPs.
        diff = lax.dot_general(a, p - n, _CONTRACT_LAST,
                               preferred_element_type=f32)         # (B, B)
    else:
        ap = lax.dot_general(a, p, _CONTRACT_LAST, preferred_element_type=f32)
        an = lax.dot_general(a, n, _CONTRACT_LAST, preferred_element_type=f32)
        a_sq = jnp.sum(a * a, axis=1, keepdims=True)               # (B, 1)
        p_sq = _row_reduce(p * p)                                  # (1, B)
        n_sq = _row_reduce(n * n)                                  # (1, B)
        z_p = _poincare_z(ap, a_sq, p_sq, hyp_c)
        z_n = _poincare_z(an, a_sq, n_sq, hyp_c)
        # Fused cross-ratio: one log per element instead of two artanh logs.
        ratio = ((1.0 - z_p) * (1.0 + z_n)) / ((1.0 + z_p) * (1.0 - z_n))
        diff = (1.0 / math.sqrt(hyp_c)) * jnp.log(ratio)           # (B, B)

    losses = jnp.maximum(diff + margin - alpha * cos_reg, 0.0)
    out_ref[...] = jnp.sum(losses, keepdims=True) * (1.0 / float(b * b))


def hyp_triplet_loss(anchor, positive, negative, *, margin, alpha, tau=0.0, hyp_c=0.0):
    """Pallas implementation of HypTripletLoss.forward (size_average=True)."""
    # TODO(synk): `tau` is stored by the PyTorch module but never used in forward().
    del tau
    b, d = anchor.shape

    if anchor.dtype != jnp.float32:
        anchor = anchor.astype(jnp.float32)
        positive = positive.astype(jnp.float32)
        negative = negative.astype(jnp.float32)

    kernel = functools.partial(
        _hyp_triplet_kernel,
        margin=float(margin), alpha=float(alpha), hyp_c=float(hyp_c))

    # Full-array BlockSpecs (block_shape == array dims) -> no wrapper padding,
    # no extra HBM round trips; the kernel's input DMA is the only traffic.
    grid_spec = pltpu.PrefetchScalarGridSpec(
        num_scalar_prefetch=0,
        grid=(1,),
        in_specs=[
            pl.BlockSpec((b, d), lambda i: (0, 0)),
            pl.BlockSpec((b, d), lambda i: (0, 0)),
            pl.BlockSpec((b, d), lambda i: (0, 0)),
        ],
        out_specs=pl.BlockSpec((1, 1), lambda i: (0, 0)),
    )

    out = pl.pallas_call(
        kernel,
        out_shape=jax.ShapeDtypeStruct((1, 1), jnp.float32),
        grid_spec=grid_spec,
        compiler_params=pltpu.CompilerParams(dimension_semantics=("arbitrary",)),
    )(anchor, positive, negative)
    return out[0, 0]


# ----------------------------- pure-JAX reference -----------------------------

def _dist_matrix_ref(x, y, c):
    """hyptorch pmath.dist_matrix: 2/sqrt(c) * artanh(sqrt(c)*||(-x) mobius+ y||)."""
    sqrt_c = math.sqrt(c)
    xy = x @ y.T                                            # (B, C)
    x2 = jnp.sum(x * x, axis=1, keepdims=True)              # (B, 1)
    y2 = jnp.sum(y * y, axis=1, keepdims=True)              # (C, 1)
    num = (1.0 - 2.0 * c * xy + c * y2.T)[:, :, None] * (-x)[:, None, :] \
        + (1.0 - c * x2)[:, :, None] * y[None, :, :]        # (B, C, D)
    denom = 1.0 - 2.0 * c * xy + (c ** 2) * x2 * y2.T       # (B, C)
    mob = num / (denom[:, :, None] + 1e-5)
    z = jnp.clip(sqrt_c * jnp.linalg.norm(mob, axis=-1), -1.0 + 1e-5, 1.0 - 1e-5)
    return 2.0 / sqrt_c * jnp.arctanh(z)


def _hyp_triplet_reference(anchor, positive, negative, margin, alpha, hyp_c):
    if hyp_c == 0.0:
        dist_pos = anchor @ positive.T
        dist_neg = anchor @ negative.T
    else:
        dist_pos = -_dist_matrix_ref(anchor, positive, hyp_c)
        dist_neg = -_dist_matrix_ref(anchor, negative, hyp_c)
    da = negative - anchor
    dp = positive - anchor
    cos = jnp.sum(da * dp, axis=1) / jnp.maximum(
        jnp.linalg.norm(da, axis=1) * jnp.linalg.norm(dp, axis=1), 1e-6)
    cos_reg = jnp.sum(cos)
    losses = jax.nn.relu(dist_pos - dist_neg + margin - alpha * cos_reg)
    return losses.mean()


if __name__ == "__main__":
    # Make the reference matmuls full f32 so the comparison is apples-to-apples.
    jax.config.update("jax_default_matmul_precision", "highest")

    key = jax.random.PRNGKey(0)
    B, D = 6, 32                      # unaligned B/D exercises the general path
    margin, alpha, tau, hyp_c = 0.2, 0.1, 0.2, 0.3

    k1, k2, k3 = jax.random.split(key, 3)
    scale = 0.05                      # keep embeddings well inside the Poincare ball
    anchor = scale * jax.random.normal(k1, (B, D), jnp.float32)
    positive = scale * jax.random.normal(k2, (B, D), jnp.float32)
    negative = scale * jax.random.normal(k3, (B, D), jnp.float32)

    for c in (hyp_c, 0.0):            # exercise both the hyperbolic and Euclidean branches
        out = hyp_triplet_loss(anchor, positive, negative,
                               margin=margin, alpha=alpha, tau=tau, hyp_c=c)
        out = jax.block_until_ready(out)
        ref = _hyp_triplet_reference(anchor, positive, negative, margin, alpha, c)
        assert np.allclose(np.asarray(out), np.asarray(ref), rtol=1e-4, atol=1e-4), \
            (c, np.asarray(out), np.asarray(ref))

    print("KERNEL_OK")
</pallas_src>

<mosaic_0001>
module attributes {stable_mosaic.version = 11 : i64} {
  func.func @_hyp_triplet_kernel(%arg0: i32, %arg1: memref<6x32xf32, #tpu.memory_space<vmem>>, %arg2: memref<6x32xf32, #tpu.memory_space<vmem>>, %arg3: memref<6x32xf32, #tpu.memory_space<vmem>>, %arg4: memref<1x1xf32, #tpu.memory_space<vmem>>) attributes {dimension_semantics = [#tpu.dimension_semantics<arbitrary>], iteration_bounds = array<i64: 1>, scalar_prefetch = 0 : i64, scratch_operands = 0 : i64, tpu.core_type = #tpu.core_type<tc>, window_params = [{pipeline_mode = #tpu.pipeline_mode<synchronous>, transform_indices = @transform_0, window_bounds = array<i64: 6, 32>}, {pipeline_mode = #tpu.pipeline_mode<synchronous>, transform_indices = @transform_1, window_bounds = array<i64: 6, 32>}, {pipeline_mode = #tpu.pipeline_mode<synchronous>, transform_indices = @transform_2, window_bounds = array<i64: 6, 32>}, {pipeline_mode = #tpu.pipeline_mode<synchronous>, transform_indices = @transform_3, window_bounds = array<i64: 1, 1>}]} {
    %c0 = arith.constant 0 : index
    %c0_0 = arith.constant 0 : index
    %0 = vector.load %arg1[%c0, %c0_0] : memref<6x32xf32, #tpu.memory_space<vmem>>, vector<6x32xf32>
    %c0_1 = arith.constant 0 : index
    %c0_2 = arith.constant 0 : index
    %1 = vector.load %arg2[%c0_1, %c0_2] : memref<6x32xf32, #tpu.memory_space<vmem>>, vector<6x32xf32>
    %c0_3 = arith.constant 0 : index
    %c0_4 = arith.constant 0 : index
    %2 = vector.load %arg3[%c0_3, %c0_4] : memref<6x32xf32, #tpu.memory_space<vmem>>, vector<6x32xf32>
    %cst = arith.constant 1.000000e+00 : f32
    %3 = vector.broadcast %cst : f32 to vector<8x32xf32>
    %4 = arith.subf %2, %0 : vector<6x32xf32>
    %5 = arith.subf %1, %0 : vector<6x32xf32>
    %6 = arith.mulf %4, %5 : vector<6x32xf32>
    %cst_5 = arith.constant dense<0.000000e+00> : vector<8x6xf32>
    %7 = tpu.matmul %3, %6, %cst_5 {dimension_numbers = #tpu.dot_dimension_numbers<[1], [1], [0], [0], [0, 0, 1, 0], [], []>, precision = #tpu.contract_precision<fp32>} : vector<8x32xf32>, vector<6x32xf32>, vector<8x6xf32> -> vector<8x6xf32>
    %8 = vector.extract_strided_slice %7 {offsets = [0, 0], sizes = [1, 6], strides = [1, 1]} : vector<8x6xf32> to vector<1x6xf32>
    %9 = arith.mulf %4, %4 : vector<6x32xf32>
    %cst_6 = arith.constant dense<0.000000e+00> : vector<8x6xf32>
    %10 = tpu.matmul %3, %9, %cst_6 {dimension_numbers = #tpu.dot_dimension_numbers<[1], [1], [0], [0], [0, 0, 1, 0], [], []>, precision = #tpu.contract_precision<fp32>} : vector<8x32xf32>, vector<6x32xf32>, vector<8x6xf32> -> vector<8x6xf32>
    %11 = vector.extract_strided_slice %10 {offsets = [0, 0], sizes = [1, 6], strides = [1, 1]} : vector<8x6xf32> to vector<1x6xf32>
    %12 = arith.mulf %5, %5 : vector<6x32xf32>
    %cst_7 = arith.constant dense<0.000000e+00> : vector<8x6xf32>
    %13 = tpu.matmul %3, %12, %cst_7 {dimension_numbers = #tpu.dot_dimension_numbers<[1], [1], [0], [0], [0, 0, 1, 0], [], []>, precision = #tpu.contract_precision<fp32>} : vector<8x32xf32>, vector<6x32xf32>, vector<8x6xf32> -> vector<8x6xf32>
    %14 = vector.extract_strided_slice %13 {offsets = [0, 0], sizes = [1, 6], strides = [1, 1]} : vector<8x6xf32> to vector<1x6xf32>
    %15 = arith.mulf %11, %14 : vector<1x6xf32>
    %16 = math.sqrt %15 : vector<1x6xf32>
    %cst_8 = arith.constant 9.99999997E-7 : f32
    %17 = vector.broadcast %cst_8 : f32 to vector<1x6xf32>
    %18 = arith.maximumf %16, %17 : vector<1x6xf32>
    %19 = arith.divf %8, %18 : vector<1x6xf32>
    %20 = vector.shape_cast %19 : vector<1x6xf32> to vector<1x1x6xf32>
    %cst_9 = arith.constant dense<0.000000e+00> : vector<1xf32>
    %21 = vector.multi_reduction <add>, %20, %cst_9 [1, 2] : vector<1x1x6xf32> to vector<1xf32>
    %22 = vector.shape_cast %21 : vector<1xf32> to vector<1x1x1xf32>
    %23 = vector.extract %22[0, 0, 0] : f32 from vector<1x1x1xf32>
    %24 = vector.broadcast %23 : f32 to vector<1x1xf32>
    %cst_10 = arith.constant dense<0.000000e+00> : vector<6x6xf32>
    %25 = tpu.matmul %0, %1, %cst_10 {dimension_numbers = #tpu.dot_dimension_numbers<[1], [1], [0], [0], [0, 0, 1, 0], [], []>, precision = #tpu.contract_precision<fp32>} : vector<6x32xf32>, vector<6x32xf32>, vector<6x6xf32> -> vector<6x6xf32>
    %cst_11 = arith.constant dense<0.000000e+00> : vector<6x6xf32>
    %26 = tpu.matmul %0, %2, %cst_11 {dimension_numbers = #tpu.dot_dimension_numbers<[1], [1], [0], [0], [0, 0, 1, 0], [], []>, precision = #tpu.contract_precision<fp32>} : vector<6x32xf32>, vector<6x32xf32>, vector<6x6xf32> -> vector<6x6xf32>
    %27 = arith.mulf %0, %0 : vector<6x32xf32>
    %cst_12 = arith.constant dense<0.000000e+00> : vector<6xf32>
    %28 = vector.multi_reduction <add>, %27, %cst_12 [1] : vector<6x32xf32> to vector<6xf32>
    %29 = vector.shape_cast %28 : vector<6xf32> to vector<6x1xf32>
    %30 = arith.mulf %1, %1 : vector<6x32xf32>
    %cst_13 = arith.constant dense<0.000000e+00> : vector<8x6xf32>
    %31 = tpu.matmul %3, %30, %cst_13 {dimension_numbers = #tpu.dot_dimension_numbers<[1], [1], [0], [0], [0, 0, 1, 0], [], []>, precision = #tpu.contract_precision<fp32>} : vector<8x32xf32>, vector<6x32xf32>, vector<8x6xf32> -> vector<8x6xf32>
    %32 = vector.extract_strided_slice %31 {offsets = [0, 0], sizes = [1, 6], strides = [1, 1]} : vector<8x6xf32> to vector<1x6xf32>
    %33 = arith.mulf %2, %2 : vector<6x32xf32>
    %cst_14 = arith.constant dense<0.000000e+00> : vector<8x6xf32>
    %34 = tpu.matmul %3, %33, %cst_14 {dimension_numbers = #tpu.dot_dimension_numbers<[1], [1], [0], [0], [0, 0, 1, 0], [], []>, precision = #tpu.contract_precision<fp32>} : vector<8x32xf32>, vector<6x32xf32>, vector<8x6xf32> -> vector<8x6xf32>
    %35 = vector.extract_strided_slice %34 {offsets = [0, 0], sizes = [1, 6], strides = [1, 1]} : vector<8x6xf32> to vector<1x6xf32>
    %cst_15 = arith.constant 6.000000e-01 : f32
    %36 = vector.broadcast %cst_15 : f32 to vector<6x6xf32>
    %37 = arith.mulf %36, %25 : vector<6x6xf32>
    %cst_16 = arith.constant 1.000000e+00 : f32
    %38 = vector.broadcast %cst_16 : f32 to vector<6x6xf32>
    %39 = arith.subf %38, %37 : vector<6x6xf32>
    %cst_17 = arith.constant 3.000000e-01 : f32
    %40 = vector.broadcast %cst_17 : f32 to vector<1x6xf32>
    %41 = arith.mulf %40, %32 : vector<1x6xf32>
    %42 = vector.broadcast %41 : vector<1x6xf32> to vector<6x6xf32>
    %43 = arith.addf %39, %42 : vector<6x6xf32>
    %cst_18 = arith.constant 3.000000e-01 : f32
    %44 = vector.broadcast %cst_18 : f32 to vector<6x1xf32>
    %45 = arith.mulf %44, %29 : vector<6x1xf32>
    %cst_19 = arith.constant 1.000000e+00 : f32
    %46 = vector.broadcast %cst_19 : f32 to vector<6x1xf32>
    %47 = arith.subf %46, %45 : vector<6x1xf32>
    %48 = arith.mulf %43, %43 : vector<6x6xf32>
    %49 = vector.broadcast %29 : vector<6x1xf32> to vector<6x6xf32>
    %50 = arith.mulf %48, %49 : vector<6x6xf32>
    %51 = vector.broadcast %47 : vector<6x1xf32> to vector<6x6xf32>
    %52 = arith.mulf %43, %51 : vector<6x6xf32>
    %cst_20 = arith.constant 2.000000e+00 : f32
    %53 = vector.broadcast %cst_20 : f32 to vector<6x6xf32>
    %54 = arith.mulf %53, %52 : vector<6x6xf32>
    %55 = arith.mulf %54, %25 : vector<6x6xf32>
    %56 = arith.subf %50, %55 : vector<6x6xf32>
    %57 = arith.mulf %47, %47 : vector<6x1xf32>
    %58 = vector.broadcast %57 : vector<6x1xf32> to vector<6x6xf32>
    %59 = vector.broadcast %32 : vector<1x6xf32> to vector<6x6xf32>
    %60 = arith.mulf %58, %59 : vector<6x6xf32>
    %61 = arith.addf %56, %60 : vector<6x6xf32>
    %cst_21 = arith.constant 0.000000e+00 : f32
    %62 = vector.broadcast %cst_21 : f32 to vector<6x6xf32>
    %63 = arith.maximumf %61, %62 : vector<6x6xf32>
    %cst_22 = arith.constant 6.000000e-01 : f32
    %64 = vector.broadcast %cst_22 : f32 to vector<6x6xf32>
    %65 = arith.mulf %64, %25 : vector<6x6xf32>
    %cst_23 = arith.constant 1.000000e+00 : f32
    %66 = vector.broadcast %cst_23 : f32 to vector<6x6xf32>
    %67 = arith.subf %66, %65 : vector<6x6xf32>
    %cst_24 = arith.constant 9.000000e-02 : f32
    %68 = vector.broadcast %cst_24 : f32 to vector<6x1xf32>
    %69 = arith.mulf %68, %29 : vector<6x1xf32>
    %70 = vector.broadcast %69 : vector<6x1xf32> to vector<6x6xf32>
    %71 = vector.broadcast %32 : vector<1x6xf32> to vector<6x6xf32>
    %72 = arith.mulf %70, %71 : vector<6x6xf32>
    %73 = arith.addf %67, %72 : vector<6x6xf32>
    %cst_25 = arith.constant 9.99999974E-6 : f32
    %74 = vector.broadcast %cst_25 : f32 to vector<6x6xf32>
    %75 = arith.addf %73, %74 : vector<6x6xf32>
    %76 = math.sqrt %63 : vector<6x6xf32>
    %cst_26 = arith.constant 0.547722578 : f32
    %77 = vector.broadcast %cst_26 : f32 to vector<6x6xf32>
    %78 = arith.mulf %77, %76 : vector<6x6xf32>
    %79 = arith.divf %78, %75 : vector<6x6xf32>
    %cst_27 = arith.constant 0.000000e+00 : f32
    %cst_28 = arith.constant 0.999989986 : f32
    %80 = vector.broadcast %cst_27 : f32 to vector<6x6xf32>
    %81 = arith.maximumf %80, %79 : vector<6x6xf32>
    %82 = vector.broadcast %cst_28 : f32 to vector<6x6xf32>
    %83 = arith.minimumf %82, %81 : vector<6x6xf32>
    %cst_29 = arith.constant 6.000000e-01 : f32
    %84 = vector.broadcast %cst_29 : f32 to vector<6x6xf32>
    %85 = arith.mulf %84, %26 : vector<6x6xf32>
    %cst_30 = arith.constant 1.000000e+00 : f32
    %86 = vector.broadcast %cst_30 : f32 to vector<6x6xf32>
    %87 = arith.subf %86, %85 : vector<6x6xf32>
    %cst_31 = arith.constant 3.000000e-01 : f32
    %88 = vector.broadcast %cst_31 : f32 to vector<1x6xf32>
    %89 = arith.mulf %88, %35 : vector<1x6xf32>
    %90 = vector.broadcast %89 : vector<1x6xf32> to vector<6x6xf32>
    %91 = arith.addf %87, %90 : vector<6x6xf32>
    %cst_32 = arith.constant 3.000000e-01 : f32
    %92 = vector.broadcast %cst_32 : f32 to vector<6x1xf32>
    %93 = arith.mulf %92, %29 : vector<6x1xf32>
    %cst_33 = arith.constant 1.000000e+00 : f32
    %94 = vector.broadcast %cst_33 : f32 to vector<6x1xf32>
    %95 = arith.subf %94, %93 : vector<6x1xf32>
    %96 = arith.mulf %91, %91 : vector<6x6xf32>
    %97 = vector.broadcast %29 : vector<6x1xf32> to vector<6x6xf32>
    %98 = arith.mulf %96, %97 : vector<6x6xf32>
    %99 = vector.broadcast %95 : vector<6x1xf32> to vector<6x6xf32>
    %100 = arith.mulf %91, %99 : vector<6x6xf32>
    %cst_34 = arith.constant 2.000000e+00 : f32
    %101 = vector.broadcast %cst_34 : f32 to vector<6x6xf32>
    %102 = arith.mulf %101, %100 : vector<6x6xf32>
    %103 = arith.mulf %102, %26 : vector<6x6xf32>
    %104 = arith.subf %98, %103 : vector<6x6xf32>
    %105 = arith.mulf %95, %95 : vector<6x1xf32>
    %106 = vector.broadcast %105 : vector<6x1xf32> to vector<6x6xf32>
    %107 = vector.broadcast %35 : vector<1x6xf32> to vector<6x6xf32>
    %108 = arith.mulf %106, %107 : vector<6x6xf32>
    %109 = arith.addf %104, %108 : vector<6x6xf32>
    %cst_35 = arith.constant 0.000000e+00 : f32
    %110 = vector.broadcast %cst_35 : f32 to vector<6x6xf32>
    %111 = arith.maximumf %109, %110 : vector<6x6xf32>
    %cst_36 = arith.constant 6.000000e-01 : f32
    %112 = vector.broadcast %cst_36 : f32 to vector<6x6xf32>
    %113 = arith.mulf %112, %26 : vector<6x6xf32>
    %cst_37 = arith.constant 1.000000e+00 : f32
    %114 = vector.broadcast %cst_37 : f32 to vector<6x6xf32>
    %115 = arith.subf %114, %113 : vector<6x6xf32>
    %cst_38 = arith.constant 9.000000e-02 : f32
    %116 = vector.broadcast %cst_38 : f32 to vector<6x1xf32>
    %117 = arith.mulf %116, %29 : vector<6x1xf32>
    %118 = vector.broadcast %117 : vector<6x1xf32> to vector<6x6xf32>
    %119 = vector.broadcast %35 : vector<1x6xf32> to vector<6x6xf32>
    %120 = arith.mulf %118, %119 : vector<6x6xf32>
    %121 = arith.addf %115, %120 : vector<6x6xf32>
    %cst_39 = arith.constant 9.99999974E-6 : f32
    %122 = vector.broadcast %cst_39 : f32 to vector<6x6xf32>
    %123 = arith.addf %121, %122 : vector<6x6xf32>
    %124 = math.sqrt %111 : vector<6x6xf32>
    %cst_40 = arith.constant 0.547722578 : f32
    %125 = vector.broadcast %cst_40 : f32 to vector<6x6xf32>
    %126 = arith.mulf %125, %124 : vector<6x6xf32>
    %127 = arith.divf %126, %123 : vector<6x6xf32>
    %cst_41 = arith.constant 0.000000e+00 : f32
    %cst_42 = arith.constant 0.999989986 : f32
    %128 = vector.broadcast %cst_41 : f32 to vector<6x6xf32>
    %129 = arith.maximumf %128, %127 : vector<6x6xf32>
    %130 = vector.broadcast %cst_42 : f32 to vector<6x6xf32>
    %131 = arith.minimumf %130, %129 : vector<6x6xf32>
    %cst_43 = arith.constant 1.000000e+00 : f32
    %132 = vector.broadcast %cst_43 : f32 to vector<6x6xf32>
    %133 = arith.subf %132, %83 : vector<6x6xf32>
    %cst_44 = arith.constant 1.000000e+00 : f32
    %134 = vector.broadcast %cst_44 : f32 to vector<6x6xf32>
    %135 = arith.addf %134, %131 : vector<6x6xf32>
    %136 = arith.mulf %133, %135 : vector<6x6xf32>
    %cst_45 = arith.constant 1.000000e+00 : f32
    %137 = vector.broadcast %cst_45 : f32 to vector<6x6xf32>
    %138 = arith.addf %137, %83 : vector<6x6xf32>
    %cst_46 = arith.constant 1.000000e+00 : f32
    %139 = vector.broadcast %cst_46 : f32 to vector<6x6xf32>
    %140 = arith.subf %139, %131 : vector<6x6xf32>
    %141 = arith.mulf %138, %140 : vector<6x6xf32>
    %142 = arith.divf %136, %141 : vector<6x6xf32>
    %143 = math.log %142 : vector<6x6xf32>
    %cst_47 = arith.constant 1.82574189 : f32
    %144 = vector.broadcast %cst_47 : f32 to vector<6x6xf32>
    %145 = arith.mulf %144, %143 : vector<6x6xf32>
    %cst_48 = arith.constant 2.000000e-01 : f32
    %146 = vector.broadcast %cst_48 : f32 to vector<6x6xf32>
    %147 = arith.addf %145, %146 : vector<6x6xf32>
    %cst_49 = arith.constant 1.000000e-01 : f32
    %148 = vector.broadcast %cst_49 : f32 to vector<1x1xf32>
    %149 = arith.mulf %148, %24 : vector<1x1xf32>
    %150 = vector.broadcast %149 : vector<1x1xf32> to vector<6x6xf32>
    %151 = arith.subf %147, %150 : vector<6x6xf32>
    %cst_50 = arith.constant 0.000000e+00 : f32
    %152 = vector.broadcast %cst_50 : f32 to vector<6x6xf32>
    %153 = arith.maximumf %151, %152 : vector<6x6xf32>
    %154 = vector.shape_cast %153 : vector<6x6xf32> to vector<1x6x6xf32>
    %cst_51 = arith.constant dense<0.000000e+00> : vector<1xf32>
    %155 = vector.multi_reduction <add>, %154, %cst_51 [1, 2] : vector<1x6x6xf32> to vector<1xf32>
    %156 = vector.shape_cast %155 : vector<1xf32> to vector<1x1x1xf32>
    %157 = vector.extract %156[0, 0, 0] : f32 from vector<1x1x1xf32>
    %158 = vector.broadcast %157 : f32 to vector<1x1xf32>
    %cst_52 = arith.constant 0.027777778 : f32
    %159 = vector.broadcast %cst_52 : f32 to vector<1x1xf32>
    %160 = arith.mulf %158, %159 : vector<1x1xf32>
    %c0_53 = arith.constant 0 : index
    %c0_54 = arith.constant 0 : index
    %161 = vector.load %arg4[%c0_53, %c0_54] : memref<1x1xf32, #tpu.memory_space<vmem>>, vector<1x1xf32>
    tpu.vector_store %arg4[%c0_53, %c0_54], %160 {strides = array<i32>} : memref<1x1xf32, #tpu.memory_space<vmem>>, vector<1x1xf32>,
    return
  }
  func.func @transform_0(%arg0: i32) -> (i32, i32) {
    %c0_i32 = arith.constant 0 : i32
    %c0_i32_0 = arith.constant 0 : i32
    %c0_i32_1 = arith.constant 0 : i32
    return %c0_i32, %c0_i32_0 : i32, i32
  }
  func.func @transform_1(%arg0: i32) -> (i32, i32) {
    %c0_i32 = arith.constant 0 : i32
    %c0_i32_0 = arith.constant 0 : i32
    %c0_i32_1 = arith.constant 0 : i32
    return %c0_i32, %c0_i32_0 : i32, i32
  }
  func.func @transform_2(%arg0: i32) -> (i32, i32) {
    %c0_i32 = arith.constant 0 : i32
    %c0_i32_0 = arith.constant 0 : i32
    %c0_i32_1 = arith.constant 0 : i32
    return %c0_i32, %c0_i32_0 : i32, i32
  }
  func.func @transform_3(%arg0: i32) -> (i32, i32) {
    %c0_i32 = arith.constant 0 : i32
    %c0_i32_0 = arith.constant 0 : i32
    %c0_i32_1 = arith.constant 0 : i32
    return %c0_i32, %c0_i32_0 : i32, i32
  }
}

</mosaic_0001>

<bundles_post_ra>
// kernel: tpu_custom_call.1
= control target key start
LH: loop header
LB: loop body
LE: loop exit
PB: predicated region body
PF: predicated region fallthrough
CT: control target
= control target key end

     0   :  { %8 = vsyncpa [#allocation3], 0  ;;  %s1605_s0 = inlined_call_operand.hbm [shape: f32[6,32], index: 0, kind: input, shape index: {}]   ;;  %s1606_s1 = inlined_call_operand.hbm [shape: f32[6,32], index: 1, kind: input, shape index: {}]   ;;  %s1607_s2 = inlined_call_operand.hbm [shape: f32[6,32], index: 2, kind: input, shape index: {}]   ;;  %s1608_s3 = inlined_call_operand.hbm [shape: f32[1,1], index: 3, kind: output, shape index: {}]  }
   0x1   :  { %9 = vsyncpa [#allocation6], 0  ;;  %s27_s14 = sshll.u32 %s1606_s1, 4  ;;  %s28_s14 = int_to_ptr.hbm [resolvable:$true] %s27_s14 }
   0x2   :  { %10 = vsyncpa [#allocation4], 0  ;;  %s1466_s15 = smov [#allocation5]   ;;  %s16_s19 = sshll.u32 %s1605_s0, 4  ;;  %s17_s19 = int_to_ptr.hbm [resolvable:$true] %s16_s19 }
   0x3   :  { %s29_s16 = sshll.u32 %s1466_s15, 4  ;;  %s1467_s20 = smov [#allocation2]   ;;  %s30_s16 = int_to_ptr.vmem [resolvable:$true] %s29_s16 }
   0x4   :  { %32 = dma.hbm_to_vmem [thread:$0]  %s28_s14, 128, %s30_s16, [#allocation6]  }
   0x5   :  { %s18_s21 = sshll.u32 %s1467_s20, 4  ;;  %s38_s24 = sshll.u32 %s1607_s2, 4  ;;  %s19_s21 = int_to_ptr.vmem [resolvable:$true] %s18_s21  ;;  %s39_s24 = int_to_ptr.hbm [resolvable:$true] %s38_s24 }
   0x6   :  { %21 = dma.hbm_to_vmem [thread:$0]  %s17_s19, 128, %s19_s21, [#allocation3]  }
   0x7   :  { %s1468_s1 = smov [#allocation7]  }
   0x8   :  { %s40_s25 = sshll.u32 %s1468_s1, 4  ;;  %s41_s25 = int_to_ptr.vmem [resolvable:$true] %s40_s25 }
   0x9   :  { %43 = dma.hbm_to_vmem [thread:$0]  %s39_s24, 128, %s41_s25, [#allocation6]  }
   0xa   :  { %1460 = dma.done.wait [#allocation3], 128  }
   0xb   :  { %1461 = vsyncadd [#allocation3], 4294967168 }
   0xc   :  { %1462 = dma.done.wait [#allocation6], 256  }
   0xd   :  { %1463 = vsyncadd [#allocation6], 4294967040  ;;  %vm62_vm0 = vcmask 261120   ;;  %v1469_v0 = vmov 0   ;;  %v1507_v4 = vld [vmem:[#allocation2] sm:$0x3f] }
   0xe   :  { %v64_v1 = vsel %vm62_vm0, 1.0, %v1469_v0  ;;  %v1509_v5 = vld [vmem:[#allocation5] sm:$0x3f]  ;;  %v1511_v6 = vld [vmem:[#allocation7] sm:$0x3f]  ;;  %v1470_v33 = vmov 1.0   ;;  %v857_v63 = vmul.f32 %v1507_v4, %v1507_v4 }
   0xf   :  { %v1502_v2 = vsub.f32 %v64_v1, %v64_v1  ;;  %v59_v7 = vsub.f32 %v1511_v6, %v1507_v4  ;;  %v60_v8 = vsub.f32 %v1509_v5, %v1507_v4  ;;  %v560_v29 = vsel %vm62_vm0, %v1509_v5, 0  ;;  %s1471_s2 = smov [#allocation8]   ;;  %s1312_s29 = sshll.u32 %s1608_s3, 4  ;;  %s1313_s29 = int_to_ptr.hbm [resolvable:$true] %s1312_s29 }
  0x10   :  { %v577_v30 = vand.u32 4294901760, %v560_v29  ;;  %v557_v37 = vsel %vm62_vm0, %v1507_v4, 0  ;;  %v709_v42 = vsel %vm62_vm0, %v1511_v6, 0  ;;  %v862_v45 = vmul.f32 %v1509_v5, %v1509_v5  ;;  %s1310_s26 = sshll.u32 %s1471_s2, 4  ;;  %s1311_s26 = int_to_ptr.vmem [resolvable:$true] %s1310_s26 }
  0x11   :  { %v1505_v3 = vand.u32 4294901760, %v1502_v2  ;;  %v61_v9 = vmul.f32 %v60_v8, %v59_v7  ;;  %v215_v11 = vmul.f32 %v59_v7, %v59_v7  ;;  %v365_v12 = vmul.f32 %v60_v8, %v60_v8 }
  0x12   :  { %v604_v32 = vsub.f32 %v560_v29, %v577_v30  ;;  %v1538_v39 = vand.u32 4294901760, %v557_v37  ;;  %v726_v43 = vand.u32 4294901760, %v709_v42  ;;  %v864_v48 = vsel %vm62_vm0, %v862_v45, 0 }
  0x13   :  { %v89_v10 = vsub.f32 %v1502_v2, %v1505_v3  ;;  %v67_v13 = vsel %vm62_vm0, %v61_v9, 0  ;;  %v217_v14 = vsel %vm62_vm0, %v215_v11, 0  ;;  %v367_v15 = vsel %vm62_vm0, %v365_v12, 0 }
  0x14   :  { %v84_v16 = vand.u32 4294901760, %v67_v13  ;;  %v234_v17 = vand.u32 4294901760, %v217_v14  ;;  %v384_v21 = vand.u32 4294901760, %v367_v15  ;;  %v605_v34 = vand.u32 4294901760, %v604_v32 }
  0x15   :  { %v1522_v18 = vand.u32 4294901760, %v89_v10  ;;  %v580_v41 = vsub.f32 %v557_v37, %v1538_v39  ;;  %v753_v46 = vsub.f32 %v709_v42, %v726_v43  ;;  %v881_v49 = vand.u32 4294901760, %v864_v48 }
  0x16   :  { %85 = vmatpush.xpose.msra.mxu0 %v84_v16  ;;  %v111_v19 = vsub.f32 %v67_v13, %v84_v16  ;;  %161 = vmatpush.xpose.msra.mxu3 %v84_v16  ;;  %v261_v20 = vsub.f32 %v217_v14, %v234_v17  ;;  %v411_v26 = vsub.f32 %v367_v15, %v384_v21  ;;  %vm858_vm1 = vcmask 259072  }
  0x17   :  { %v606_v36 = vsub.f32 %v604_v32, %v605_v34  ;;  %v581_v44 = vand.u32 4294901760, %v580_v41  ;;  %v754_v50 = vand.u32 4294901760, %v753_v46  ;;  %v908_v51 = vsub.f32 %v864_v48, %v881_v49 }
  0x18   :  { %138 = vmatpush.xpose.msra.mxu2 %v111_v19  ;;  %v112_v22 = vand.u32 4294901760, %v111_v19  ;;  %v262_v23 = vand.u32 4294901760, %v261_v20  ;;  %v412_v31 = vand.u32 4294901760, %v411_v26  ;;  %v1012_v58 = vmul.f32 %v1511_v6, %v1511_v6 }
  0x19   :  { %91 = vmatmul.f32.vlgmr.msra.gmra.mxu0 %v1522_v18  ;;  %165 = vmatmul.f32.vlgmr.msra.gmra.mxu3 %v1505_v3  ;;  %v607_v40 = vand.u32 4294901760, %v606_v36  ;;  %v582_v47 = vsub.f32 %v580_v41, %v581_v44  ;;  %v909_v53 = vand.u32 4294901760, %v908_v51  ;;  %v755_v54 = vsub.f32 %v753_v46, %v754_v50 }
  0x1a   :  { %v113_v24 = vsub.f32 %v111_v19, %v112_v22  ;;  %187 = vmatpush.xpose.msrb.mxu0 %v112_v22  ;;  %v263_v25 = vsub.f32 %v261_v20, %v262_v23  ;;  %v413_v35 = vsub.f32 %v411_v26, %v412_v31  ;;  %v1014_v59 = vsel %vm62_vm0, %v1012_v58, 0 }
  0x1b   :  { %141 = vmatmul.f32.vlgmr.msra.gmra.mxu2 %v1502_v2  ;;  %v583_v52 = vand.u32 4294901760, %v582_v47  ;;  %v910_v55 = vsub.f32 %v908_v51, %v909_v53  ;;  %v756_v56 = vand.u32 4294901760, %v755_v54  ;;  %v1031_v60 = vand.u32 4294901760, %v1014_v59 }
  0x1c   :  { %235 = vmatpush.xpose.msrb.mxu2 %v234_v17  ;;  %v114_v27 = vand.u32 4294901760, %v113_v24  ;;  %v264_v28 = vand.u32 4294901760, %v263_v25  ;;  %v414_v38 = vand.u32 4294901760, %v413_v35  ;;  %v859_v1 = vsel %vm858_vm1, %v857_v63, 0.0 }
  0x1d   :  { %v911_v57 = vand.u32 4294901760, %v910_v55  ;;  %v1058_v61 = vsub.f32 %v1014_v59, %v1031_v60  ;;  %860 = vadd.xlane.f32.xlu0 %v859_v1  ;;  %vm544_vm8 = vcmask 40960  }
  0x1e   :  { %288 = vmatpush.xpose.msra.mxu0 %v261_v20  ;;  %115 = vmatpush.xpose.msra.mxu1 %v114_v27 }
  0x1f   :  { %265 = vmatpush.xpose.msrb.mxu3 %v264_v28  ;;  %v1059_v62 = vand.u32 4294901760, %v1058_v61 }
  0x20   :  { %337 = vmatpush.xpose.msra.mxu2 %v262_v23 }
  0x21   :  { %1323 = vmatmul.msk.f32.vlgmr.msra.gmra.mxu1 %vm62_vm0, %v1470_v33  ;;  %1324 = vmatmul.msk.f32.vlgmr.msrb.gmra.mxu0 %vm62_vm0, %v1470_v33  ;;  %v1060_v0 = vsub.f32 %v1058_v61, %v1059_v62 }
  0x22   :  { %209 = vmatpush.xpose.msrb.mxu1 %v84_v16  ;;  %1326 = vmatmul.msk.f32.vlgmr.msrb.gmra.mxu3 %vm62_vm0, %v1470_v33 }
  0x23   :  { %359 = vmatpush.xpose.msra.mxu3 %v234_v17  ;;  %241 = vmatmul.f32.vlgmr.msrb.gmra.mxu2 %v1522_v18  ;;  %v1061_v5 = vand.u32 4294901760, %v1060_v0 }
  0x24   :  { %385 = vmatpush.xpose.msrb.mxu0 %v384_v21  ;;  %438 = vmatpush.xpose.msrb.mxu2 %v411_v26 }
  0x26   :  { %311 = vmatpush.xpose.msra.mxu1 %v234_v17 }
  0x27   :  { %461 = vmatpush.xpose.msrb.mxu3 %v384_v21 }
  0x29   :  { %1325 = vmatmul.msk.f32.vlgmr.msrb.gmra.mxu1 %vm62_vm0, %v1470_v33  ;;  %291 = vmatmul.f32.vlgmr.msra.gmra.mxu0 %v1502_v2 }
  0x2a   :  { %1328 = vmatmul.msk.f32.vlgmr.msra.gmra.mxu3 %vm62_vm0, %v1470_v33  ;;  %415 = vmatpush.xpose.msrb.mxu1 %v414_v38 }
  0x2b   :  { %1327 = vmatmul.msk.f32.vlgmr.msra.gmra.mxu2 %vm62_vm0, %v1470_v33  ;;  %487 = vmatpush.xpose.msra.mxu0 %v412_v31 }
  0x2c   :  { %578 = vmatpush.xpose.msra.mxu2 %v577_v30  ;;  %608 = vmatpush.xpose.msra.mxu3 %v607_v40 }
  0x31   :  { %315 = vmatmul.f32.vlgmr.msra.gmra.mxu1 %v1505_v3  ;;  %391 = vmatmul.f32.vlgmr.msrb.gmra.mxu0 %v1522_v18 }
  0x32   :  { %465 = vmatmul.f32.vlgmr.msrb.gmra.mxu3 %v1505_v3  ;;  %509 = vmatpush.xpose.msra.mxu1 %v384_v21 }
  0x33   :  { %441 = vmatmul.f32.vlgmr.msrb.gmra.mxu2 %v1502_v2  ;;  %631 = vmatpush.xpose.msrb.mxu0 %v604_v32 }
  0x34   :  { %680 = vmatpush.xpose.msrb.mxu2 %v605_v34  ;;  %702 = vmatpush.xpose.msrb.mxu3 %v577_v30 }
  0x39   :  { %1329 = vmatmul.msk.f32.vlgmr.msrb.gmra.mxu1 %vm62_vm0, %v1470_v33  ;;  %1330 = vmatmul.msk.f32.vlgmr.msra.gmra.mxu0 %vm62_vm0, %v1470_v33 }
  0x3a   :  { %610 = vmatmul.f32.vlgmr.msra.gmra.mxu3 %v1538_v39  ;;  %654 = vmatpush.xpose.msrb.mxu1 %v577_v30 }
  0x3b   :  { %584 = vmatmul.f32.vlgmr.msra.gmra.mxu2 %v583_v52  ;;  %727 = vmatpush.xpose.msra.mxu0 %v726_v43 }
  0x3c   :  { %780 = vmatpush.xpose.msra.mxu2 %v753_v46  ;;  %803 = vmatpush.xpose.msra.mxu3 %v726_v43 }
  0x41   :  { %1331 = vmatmul.msk.f32.vlgmr.msra.gmra.mxu1 %vm62_vm0, %v1470_v33  ;;  %634 = vmatmul.f32.vlgmr.msrb.gmra.mxu0 %v580_v41 }
  0x42   :  { %704 = vmatmul.f32.vlgmr.msrb.gmra.mxu3 %v1538_v39  ;;  %757 = vmatpush.xpose.msra.mxu1 %v756_v56 }
  0x43   :  { %682 = vmatmul.f32.vlgmr.msrb.gmra.mxu2 %v1538_v39  ;;  %829 = vmatpush.xpose.msrb.mxu0 %v754_v50 }
  0x44   :  { %882 = vmatpush.xpose.msrb.mxu2 %v881_v49  ;;  %912 = vmatpush.xpose.msrb.mxu3 %v911_v57 }
  0x49   :  { %658 = vmatmul.f32.vlgmr.msrb.gmra.mxu1 %v581_v44  ;;  %733 = vmatmul.f32.vlgmr.msra.gmra.mxu0 %v583_v52 }
  0x4a   :  { %807 = vmatmul.f32.vlgmr.msra.gmra.mxu3 %v581_v44  ;;  %851 = vmatpush.xpose.msrb.mxu1 %v726_v43 }
  0x4b   :  { %783 = vmatmul.f32.vlgmr.msra.gmra.mxu2 %v580_v41  ;;  %935 = vmatpush.xpose.msra.mxu0 %v908_v51 }
  0x4c   :  { %984 = vmatpush.xpose.msra.mxu2 %v909_v53  ;;  %1006 = vmatpush.xpose.msra.mxu3 %v881_v49 }
  0x51   :  { %759 = vmatmul.f32.vlgmr.msra.gmra.mxu1 %v1538_v39  ;;  %831 = vmatmul.f32.vlgmr.msrb.gmra.mxu0 %v1538_v39 }
  0x52   :  { %1332 = vmatmul.msk.f32.vlgmr.msrb.gmra.mxu3 %vm62_vm0, %v1470_v33  ;;  %958 = vmatpush.xpose.msra.mxu1 %v881_v49 }
  0x53   :  { %888 = vmatmul.f32.vlgmr.msrb.gmra.mxu2 %v1522_v18  ;;  %1032 = vmatpush.xpose.msrb.mxu0 %v1031_v60 }
  0x54   :  { %1085 = vmatpush.xpose.msrb.mxu2 %v1058_v61  ;;  %1108 = vmatpush.xpose.msrb.mxu3 %v1031_v60 }
  0x59   :  { %853 = vmatmul.f32.vlgmr.msrb.gmra.mxu1 %v1538_v39  ;;  %938 = vmatmul.f32.vlgmr.msra.gmra.mxu0 %v1502_v2 }
  0x5a   :  { %1334 = vmatmul.msk.f32.vlgmr.msra.gmra.mxu3 %vm62_vm0, %v1470_v33  ;;  %1062 = vmatpush.xpose.msrb.mxu1 %v1061_v5 }
  0x5b   :  { %1333 = vmatmul.msk.f32.vlgmr.msra.gmra.mxu2 %vm62_vm0, %v1470_v33  ;;  %1134 = vmatpush.xpose.msra.mxu0 %v1059_v62 }
  0x61   :  { %962 = vmatmul.f32.vlgmr.msra.gmra.mxu1 %v1505_v3  ;;  %1038 = vmatmul.f32.vlgmr.msrb.gmra.mxu0 %v1522_v18 }
  0x62   :  { %1112 = vmatmul.f32.vlgmr.msrb.gmra.mxu3 %v1505_v3  ;;  %1156 = vmatpush.xpose.msra.mxu1 %v1031_v60 }
  0x63   :  { %1088 = vmatmul.f32.vlgmr.msrb.gmra.mxu2 %v1502_v2 }
  0x69   :  { %1335 = vmatmul.msk.f32.vlgmr.msrb.gmra.mxu1 %vm62_vm0, %v1470_v33  ;;  %1336 = vmatmul.msk.f32.vlgmr.msra.gmra.mxu0 %vm62_vm0, %v1470_v33 }
  0x71   :  { %1337 = vmatmul.msk.f32.vlgmr.msra.gmra.mxu1 %vm62_vm0, %v1470_v33 }
  0x96   :  { %v92_v4 = vpop.f32.mrf.mxu0 }
  0x9c   :  { %v166_v6 = vpop.f32.mrf.mxu3 }
  0x9e   :  { %v118_v7 = vpop.f32.mrf.mxu1  ;;  %v142_v8 = vpop.f32.mrf.mxu2 }
  0x9f   :  { %v119_v9 = vadd.f32 %v118_v7, %v92_v4  ;;  %v190_v10 = vpop.f32.mrf.mxu0 }
  0xa1   :  { %v143_v11 = vadd.f32 %v142_v8, %v119_v9 }
  0xa3   :  { %v167_v3 = vadd.f32 %v166_v6, %v143_v11 }
  0xa5   :  { %v191_v12 = vadd.f32 %v190_v10, %v167_v3  ;;  %v268_v13 = vpop.f32.mrf.mxu3 }
  0xa6   :  { %v212_v2 = vpop.f32.mrf.mxu1  ;;  %v242_v14 = vpop.f32.mrf.mxu2 }
  0xa7   :  { %v1592_v15 = vadd.f32 %v212_v2, %v191_v12  ;;  %v292_v16 = vpop.f32.mrf.mxu0  ;;  %v269_v21 = vadd.f32 %v268_v13, %v242_v14 }
  0xa9   :  { %v293_v22 = vadd.f32 %v292_v16, %v269_v21 }
  0xad   :  { %v362_v17 = vpop.f32.mrf.mxu3 }
  0xae   :  { %v316_v18 = vpop.f32.mrf.mxu1  ;;  %v340_v19 = vpop.f32.mrf.mxu2 }
  0xaf   :  { %v392_v20 = vpop.f32.mrf.mxu0  ;;  %v317_v25 = vadd.f32 %v316_v18, %v293_v22 }
  0xb1   :  { %v341_v30 = vadd.f32 %v340_v19, %v317_v25 }
  0xb3   :  { %v363_v34 = vadd.f32 %v362_v17, %v341_v30 }
  0xb5   :  { %v466_v27 = vpop.f32.mrf.mxu3 }
  0xb6   :  { %v418_v23 = vpop.f32.mrf.mxu1  ;;  %v442_v24 = vpop.f32.mrf.mxu2 }
  0xb7   :  { %v419_v26 = vadd.f32 %v418_v23, %v392_v20  ;;  %v490_v29 = vpop.f32.mrf.mxu0 }
  0xb9   :  { %v443_v28 = vadd.f32 %v442_v24, %v419_v26 }
  0xbb   :  { %v467_v31 = vadd.f32 %v466_v27, %v443_v28 }
  0xbd   :  { %v491_v32 = vadd.f32 %v490_v29, %v467_v31  ;;  %v611_v39 = vpop.f32.mrf.mxu3 }
  0xbe   :  { %v512_v33 = vpop.f32.mrf.mxu1  ;;  %v585_v37 = vpop.f32.mrf.mxu2 }
  0xbf   :  { %v513_v35 = vadd.f32 %v512_v33, %v491_v32  ;;  %v635_v43 = vpop.f32.mrf.mxu0  ;;  %v612_v16 = vadd.f32 %v611_v39, %v585_v37 }
  0xc1   :  { %v515_v36 = vmul.f32 %v513_v35, %v363_v34  ;;  %v636_v22 = vadd.f32 %v635_v43, %v612_v16 }
  0xc3   :  { %1348 = vrsqrt.f32 %v515_v36  ;;  %vm523_vm2 = vcmp.eq.f32.partialorder %v515_v36, inf  ;;  %v526_v51 = vand.u32 2147483648, %v515_v36  ;;  %vm525_vm3 = vcmp.eq.f32.partialorder %v515_v36, 0.0 }
  0xc5   :  { %v705_v48 = vpop.f32.mrf.mxu3 }
  0xc6   :  { %v659_v41 = vpop.f32.mrf.mxu1  ;;  %v683_v45 = vpop.f32.mrf.mxu2 }
  0xc7   :  { %v734_v53 = vpop.f32.mrf.mxu0  ;;  %v660_v27 = vadd.f32 %v659_v41, %v636_v22 }
  0xc9   :  { %v1349_v38 = vpop.eup %1348  ;;  %v684_v31 = vadd.f32 %v683_v45, %v660_v27 }
  0xca   :  { %v517_v40 = vmul.f32 %v1349_v38, %v515_v36 }
  0xcc   :  { %v518_v42 = vmul.f32 %v1349_v38, %v517_v40 }
  0xcd   :  { %v808_v57 = vpop.f32.mrf.mxu3 }
  0xce   :  { %v519_v44 = vmul.f32 0.5, %v518_v42  ;;  %v760_v50 = vpop.f32.mrf.mxu1  ;;  %v784_v56 = vpop.f32.mrf.mxu2 }
  0xcf   :  { %v832_v60 = vpop.f32.mrf.mxu0  ;;  %v761_v19 = vadd.f32 %v760_v50, %v734_v53 }
  0xd0   :  { %v520_v46 = vsub.f32 1.5, %v519_v44 }
  0xd1   :  { %v785_v24 = vadd.f32 %v784_v56, %v761_v19 }
  0xd2   :  { %v521_v47 = vmul.f32 %v1349_v38, %v520_v46  ;;  %v861_v46 = vpop.xlane.xlu0 %860 }
  0xd3   :  { %v809_v29 = vadd.f32 %v808_v57, %v785_v24 }
  0xd4   :  { %v522_v49 = vmul.f32 %v521_v47, %v515_v36 }
  0xd5   :  { %v915_v4 = vpop.f32.mrf.mxu3  ;;  %v833_v33 = vadd.f32 %v832_v60, %v809_v29 }
  0xd6   :  { %v524_v52 = vsel %vm523_vm2, %v515_v36, %v522_v49  ;;  %v854_v58 = vpop.f32.mrf.mxu1  ;;  %v889_v62 = vpop.f32.mrf.mxu2  ;;  %v706_v36 = vadd.f32 %v705_v48, %v684_v31  ;;  %v1167_v49 = vmul.f32 0.3, %v861_v46 }
  0xd7   :  { %v527_v54 = vsel %vm525_vm3, %v526_v51, %v524_v52  ;;  %v939_v11 = vpop.f32.mrf.mxu0  ;;  %v916_v17 = vadd.f32 %v915_v4, %v889_v62  ;;  %v855_v38 = vadd.f32 %v854_v58, %v833_v33 }
  0xd8   :  { %v528_v55 = vmax.f32 %v527_v54, 1e-06  ;;  %v1162_v40 = vmul.f32 0.6, %v706_v36  ;;  %v1168_v45 = vsub.f32 1.0, %v1167_v49 }
  0xd9   :  { %v940_v23 = vadd.f32 %v939_v11, %v916_v17  ;;  %v1214_v43 = vmul.f32 0.6, %v855_v38 }
  0xda   :  { %1350 = vrcp.f32 %v528_v55  ;;  %v540_v0 = vand.u32 2147483648, %v528_v55  ;;  %v538_v5 = vand.u32 2147483647, %v528_v55  ;;  %vm534_vm5 = vweird.f32 %v528_v55 }
  0xdb   :  { %v1163_v47 = vsub.f32 1.0, %v1162_v40  ;;  %v1215_v50 = vsub.f32 1.0, %v1214_v43  ;;  %v1175_v62 = vmul.f32 %v1168_v45, %v1168_v45 }
  0xdc   :  { %v541_v7 = vor.u32 1.1754944e-38, %v540_v0  ;;  %vm539_vm7 = vcmp.eq.f32.partialorder %v538_v5, 8.507059e+37 }
  0xdd   :  { %v1009_v2 = vpop.f32.mrf.mxu3 }
  0xde   :  { %v963_v8 = vpop.f32.mrf.mxu1  ;;  %v987_v12 = vpop.f32.mrf.mxu2 }
  0xdf   :  { %v1039_v18 = vpop.f32.mrf.mxu0  ;;  %v964_v28 = vadd.f32 %v963_v8, %v940_v23 }
  0xe0   :  { %v1351_v59 = vpop.eup %1350 }
  0xe1   :  { %v530_v61 = vmul.f32 %v1351_v59, %v528_v55  ;;  %vm535_vm4 = vweird.f32 %v1351_v59  ;;  %v988_v32 = vadd.f32 %v987_v12, %v964_v28 }
  0xe2   :  { %vm536_vm6 = vmor %vm534_vm5, %vm535_vm4 }
  0xe3   :  { %v531_v63 = vsub.f32 1.0, %v530_v61  ;;  %v1010_v37 = vadd.f32 %v1009_v2, %v988_v32 }
  0xe5   :  { %v532_v1 = vmul.f32 %v1351_v59, %v531_v63  ;;  %v1113_v26 = vpop.f32.mrf.mxu3  ;;  %v1164_v42 = vmul.f32 0.3, %v1010_v37 }
  0xe6   :  { %v1065_v14 = vpop.f32.mrf.mxu1  ;;  %v1089_v21 = vpop.f32.mrf.mxu2 }
  0xe7   :  { %v533_v6 = vadd.f32 %v1351_v59, %v532_v1  ;;  %v1066_v20 = vadd.f32 %v1065_v14, %v1039_v18  ;;  %v1137_v30 = vpop.f32.mrf.mxu0  ;;  %v1165_v41 = vperm.slane %v1164_v42, 0 }
  0xe9   :  { %v537_v9 = vsel %vm536_vm6, %v1351_v59, %v533_v6  ;;  %v1090_v25 = vadd.f32 %v1089_v21, %v1066_v20  ;;  %v1166_v52 = vadd.f32 %v1165_v41, %v1163_v47  ;;  %v1176_v59 = vperm.slane %v1010_v37, 0 }
  0xea   :  { %v542_v10 = vsel %vm539_vm7, %v541_v7, %v537_v9 }
  0xeb   :  { %v543_v3 = vmul.f32 %v542_v10, %v1592_v15  ;;  %v1114_v15 = vadd.f32 %v1113_v26, %v1090_v25  ;;  %v1171_v54 = vmul.f32 %v1168_v45, %v1166_v52  ;;  %v1169_v56 = vmul.f32 %v1166_v52, %v1166_v52 }
  0xec   :  { %v1177_v4 = vmul.f32 %v1176_v59, %v1175_v62  ;;  %v1180_v10 = vmul.f32 0.09, %v861_v46 }
  0xed   :  { %v545_v13 = vsel %vm544_vm8, %v543_v3, 0.0  ;;  %v1138_v34 = vadd.f32 %v1137_v30, %v1114_v15  ;;  %v1172_v48 = vmul.f32 2.0, %v1171_v54  ;;  %v1170_v60 = vmul.f32 %v1169_v56, %v861_v46 }
  0xee   :  { %546 = vadd.xlane.f32.xlu0 %v545_v13  ;;  %v1159_v35 = vpop.f32.mrf.mxu1  ;;  %v1181_v12 = vmul.f32 %v1180_v10, %v1176_v59 }
  0xef   :  { %v1160_v39 = vadd.f32 %v1159_v35, %v1138_v34  ;;  %v1173_v61 = vmul.f32 %v1172_v48, %v706_v36 }
  0xf0   :  { %v1182_v2 = vadd.f32 %v1181_v12, %v1163_v47 }
  0xf1   :  { %v1216_v44 = vmul.f32 0.3, %v1160_v39  ;;  %v1225_v63 = vperm.slane %v1160_v39, 0  ;;  %v1174_v5 = vsub.f32 %v1170_v60, %v1173_v61 }
  0xf2   :  { %v1183_v18 = vadd.f32 1e-05, %v1182_v2 }
  0xf3   :  { %v1217_v51 = vperm.slane %v1216_v44, 0  ;;  %v1226_v7 = vmul.f32 %v1225_v63, %v1175_v62  ;;  %v1178_v8 = vadd.f32 %v1177_v4, %v1174_v5  ;;  %v1229_v13 = vmul.f32 %v1225_v63, %v1180_v10 }
  0xf4   :  { %vm1202_vm10 = vweird.f32 %v1183_v18  ;;  %v1208_v40 = vand.u32 2147483648, %v1183_v18  ;;  %v1206_v43 = vand.u32 2147483647, %v1183_v18 }
  0xf5   :  { %v1218_v53 = vadd.f32 %v1217_v51, %v1215_v50  ;;  %v1179_v11 = vmax.f32 %v1178_v8, 0.0  ;;  %v1230_v14 = vadd.f32 %v1229_v13, %v1215_v50 }
  0xf6   :  { %vm1207_vm3 = vcmp.eq.f32.partialorder %v1206_v43, 8.507059e+37 }
  0xf7   :  { %v1221_v55 = vmul.f32 %v1218_v53, %v1168_v45  ;;  %v1219_v57 = vmul.f32 %v1218_v53, %v1218_v53  ;;  %1352 = vrsqrt.f32 %v1179_v11  ;;  %v1231_v19 = vadd.f32 1e-05, %v1230_v14 }
  0xf8   :  { %vm1191_vm9 = vcmp.eq.f32.partialorder %v1179_v11, inf  ;;  %v1194_v37 = vand.u32 2147483648, %v1179_v11  ;;  %vm1193_vm13 = vcmp.eq.f32.partialorder %v1179_v11, 0.0  ;;  %v1209_v45 = vor.u32 1.1754944e-38, %v1208_v40 }
  0xf9   :  { %v1222_v58 = vmul.f32 2.0, %v1221_v55  ;;  %v1220_v0 = vmul.f32 %v1219_v57, %v861_v46  ;;  %vm1250_vm14 = vweird.f32 %v1231_v19  ;;  %v1256_v46 = vand.u32 2147483648, %v1231_v19 }
  0xfa   :  { %v1254_v51 = vand.u32 2147483647, %v1231_v19 }
  0xfb   :  { %v1223_v1 = vmul.f32 %v1222_v58, %v855_v38  ;;  %v1257_v54 = vor.u32 1.1754944e-38, %v1256_v46 }
  0xfc   :  { %vm1255_vm4 = vcmp.eq.f32.partialorder %v1254_v51, 8.507059e+37 }
  0xfd   :  { %v1224_v6 = vsub.f32 %v1220_v0, %v1223_v1  ;;  %v1353_v16 = vpop.eup %1352 }
  0xfe   :  { %v1185_v20 = vmul.f32 %v1353_v16, %v1179_v11 }
  0xff   :  { %v1227_v9 = vadd.f32 %v1226_v7, %v1224_v6 }
 0x100   :  { %v1186_v22 = vmul.f32 %v1353_v16, %v1185_v20 }
 0x101   :  { %v1228_v3 = vmax.f32 %v1227_v9, 0.0 }
 0x102   :  { %v1187_v25 = vmul.f32 0.5, %v1186_v22 }
 0x103   :  { %1354 = vrsqrt.f32 %v1228_v3  ;;  %vm1239_vm12 = vcmp.eq.f32.partialorder %v1228_v3, inf  ;;  %vm1241_vm0 = vcmp.eq.f32.partialorder %v1228_v3, 0.0  ;;  %v1242_v44 = vand.u32 2147483648, %v1228_v3 }
 0x104   :  { %1356 = vrcp.f32 %v1183_v18  ;;  %v1188_v15 = vsub.f32 1.5, %v1187_v25 }
 0x105   :  { %1358 = vrcp.f32 %v1231_v19 }
 0x106   :  { %v1189_v33 = vmul.f32 %v1353_v16, %v1188_v15 }
 0x108   :  { %v1190_v36 = vmul.f32 %v1189_v33, %v1179_v11 }
 0x109   :  { %v1355_v17 = vpop.eup %1354 }
 0x10a   :  { %v1233_v21 = vmul.f32 %v1355_v17, %v1228_v3  ;;  %v1357_v24 = vpop.eup %1356  ;;  %v1192_v47 = vsel %vm1191_vm9, %v1179_v11, %v1190_v36  ;;  %vm1290_vm9 = vcmask 46080  }
 0x10b   :  { %v1359_v27 = vpop.eup %1358  ;;  %v1198_v28 = vmul.f32 %v1357_v24, %v1183_v18  ;;  %vm1203_vm11 = vweird.f32 %v1357_v24  ;;  %v1195_v52 = vsel %vm1193_vm13, %v1194_v37, %v1192_v47 }
 0x10c   :  { %v1234_v23 = vmul.f32 %v1355_v17, %v1233_v21  ;;  %v1246_v29 = vmul.f32 %v1359_v27, %v1231_v19  ;;  %vm1251_vm15 = vweird.f32 %v1359_v27  ;;  %vm1596_vm1 = vmor %vm1202_vm10, %vm1203_vm11  ;;  %v1196_v48 = vmul.f32 0.5477226, %v1195_v52 }
 0x10d   :  { %v1199_v31 = vsub.f32 1.0, %v1198_v28  ;;  %vm1252_vm2 = vmor %vm1250_vm14, %vm1251_vm15  ;;  %vm1303_vm10 = vcmask 0  }
 0x10e   :  { %v1235_v26 = vmul.f32 0.5, %v1234_v23  ;;  %v1247_v32 = vsub.f32 1.0, %v1246_v29 }
 0x10f   :  { %v1200_v35 = vmul.f32 %v1357_v24, %v1199_v31 }
 0x110   :  { %v1236_v30 = vsub.f32 1.5, %v1235_v26  ;;  %v1248_v39 = vmul.f32 %v1359_v27, %v1247_v32 }
 0x111   :  { %v1201_v42 = vadd.f32 %v1357_v24, %v1200_v35 }
 0x112   :  { %v1237_v34 = vmul.f32 %v1355_v17, %v1236_v30  ;;  %v1249_v50 = vadd.f32 %v1359_v27, %v1248_v39 }
 0x113   :  { %v1205_v55 = vsel %vm1596_vm1, %v1357_v24, %v1201_v42 }
 0x114   :  { %v1238_v38 = vmul.f32 %v1237_v34, %v1228_v3  ;;  %v1253_v56 = vsel %vm1252_vm2, %v1359_v27, %v1249_v50  ;;  %v1210_v58 = vsel %vm1207_vm3, %v1209_v45, %v1205_v55 }
 0x115   :  { %v1258_v59 = vsel %vm1255_vm4, %v1257_v54, %v1253_v56  ;;  %v1211_v60 = vmul.f32 %v1210_v58, %v1196_v48 }
 0x116   :  { %v1240_v49 = vsel %vm1239_vm12, %v1228_v3, %v1238_v38 }
 0x117   :  { %v1243_v53 = vsel %vm1241_vm0, %v1242_v44, %v1240_v49  ;;  %v1212_v62 = vmax.f32 %v1211_v60, 0.0 }
 0x118   :  { %v1244_v57 = vmul.f32 0.5477226, %v1243_v53 }
 0x119   :  { %v1213_v1 = vmin.f32 %v1212_v62, 0.99999 }
 0x11a   :  { %v1259_v61 = vmul.f32 %v1258_v59, %v1244_v57 }
 0x11b   :  { %v1265_v7 = vadd.f32 1.0, %v1213_v1  ;;  %v1262_v20 = vsub.f32 1.0, %v1213_v1 }
 0x11c   :  { %v1260_v63 = vmax.f32 %v1259_v61, 0.0 }
 0x11e   :  { %v1261_v5 = vmin.f32 %v1260_v63, 0.99999 }
 0x120   :  { %v1266_v8 = vsub.f32 1.0, %v1261_v5  ;;  %v1263_v21 = vadd.f32 1.0, %v1261_v5 }
 0x122   :  { %v1267_v11 = vmul.f32 %v1266_v8, %v1265_v7  ;;  %v1264_v24 = vmul.f32 %v1263_v21, %v1262_v20 }
 0x124   :  { %1360 = vrcp.f32 %v1267_v11  ;;  %vm1273_vm5 = vweird.f32 %v1267_v11  ;;  %v1279_v17 = vand.u32 2147483648, %v1267_v11  ;;  %v1277_v19 = vand.u32 2147483647, %v1267_v11 }
 0x126   :  { %v1280_v22 = vor.u32 1.1754944e-38, %v1279_v17  ;;  %vm1278_vm8 = vcmp.eq.f32.partialorder %v1277_v19, 8.507059e+37 }
 0x12a   :  { %v1361_v13 = vpop.eup %1360 }
 0x12b   :  { %v1269_v2 = vmul.f32 %v1361_v13, %v1267_v11  ;;  %vm1274_vm6 = vweird.f32 %v1361_v13 }
 0x12c   :  { %vm1275_vm7 = vmor %vm1273_vm5, %vm1274_vm6 }
 0x12d   :  { %v1270_v14 = vsub.f32 1.0, %v1269_v2 }
 0x12f   :  { %v1271_v16 = vmul.f32 %v1361_v13, %v1270_v14 }
 0x131   :  { %v1272_v18 = vadd.f32 %v1361_v13, %v1271_v16 }
 0x133   :  { %v1276_v23 = vsel %vm1275_vm7, %v1361_v13, %v1272_v18 }
 0x134   :  { %v1281_v25 = vsel %vm1278_vm8, %v1280_v22, %v1276_v23 }
 0x135   :  { %v1282_v26 = vmul.f32 %v1281_v25, %v1264_v24 }
 0x137   :  { %1362 = vlog2.f32 %v1282_v26 }
 0x13d   :  { %v1363_v27 = vpop.eup %1362 }
 0x13e   :  { %v1284_v28 = vmul.f32 0.6931472, %v1363_v27 }
 0x140   :  { %v1285_v29 = vmul.f32 1.8257419, %v1284_v28 }
 0x142   :  { %v1286_v31 = vadd.f32 0.2, %v1285_v29 }
 0x161   :  { %v547_v0 = vpop.xlane.xlu0 %546 }
 0x162   :  { %v548_v4 = vrot.slane %v547_v0, 4 }
 0x164   :  { %v549_v6 = vadd.f32 %v548_v4, %v547_v0 }
 0x166   :  { %v550_v9 = vrot.slane %v549_v6, 2 }
 0x168   :  { %v551_v10 = vadd.f32 %v550_v9, %v549_v6 }
 0x16a   :  { %v552_v3 = vrot.slane %v551_v10, 1 }
 0x16c   :  { %v553_v12 = vadd.f32 %v552_v3, %v551_v10 }
 0x16e   :  { %1338 = vpush %v553_v12 }
 0x19f   :  { %s1339_s0 = spop %1338 }
 0x1a0   :  { %v555_v15 = vstv %s1339_s0 }
 0x1a1   :  { %v1287_v30 = vmul.f32 0.1, %v555_v15 }
 0x1a3   :  { %v1288_v32 = vsub.f32 %v1286_v31, %v1287_v30 }
 0x1a5   :  { %v1289_v33 = vmax.f32 %v1288_v32, 0.0 }
 0x1a7   :  { %v1291_v34 = vsel %vm1290_vm9, %v1289_v33, 0.0 }
 0x1a8   :  { %1292 = vadd.xlane.f32.xlu1 %v1291_v34 }
 0x21b   :  { %v1293_v35 = vpop.xlane.xlu1 %1292 }
 0x21c   :  { %v1294_v36 = vrot.slane %v1293_v35, 4 }
 0x21e   :  { %v1295_v37 = vadd.f32 %v1294_v36, %v1293_v35 }
 0x220   :  { %v1296_v38 = vrot.slane %v1295_v37, 2 }
 0x222   :  { %v1297_v39 = vadd.f32 %v1296_v38, %v1295_v37 }
 0x224   :  { %v1298_v40 = vrot.slane %v1297_v39, 1 }
 0x226   :  { %v1299_v42 = vadd.f32 %v1298_v40, %v1297_v39 }
 0x228   :  { %1340 = vpush %v1299_v42 }
 0x259   :  { %s1341_s30 = spop %1340 }
 0x25a   :  { %v1301_v43 = vstv %s1341_s30 }
 0x25b   :  { %v1302_v44 = vmul.f32 0.027777778, %v1301_v43 }
 0x25d   :  { %1304 = vst.msk [vmem:[#allocation8] sm:$0x1] %vm1303_vm10, %v1302_v44 }
 0x25e   :  { %1315 = dma.vmem_to_hbm [thread:$0]  %s1311_s26, 16, %s1313_s29, [#allocation4]  }
 0x25f   :  { %1464 = dma.done.wait [#allocation4], 16  }
 0x260   :  { %1465 = vsyncadd [#allocation4], 4294967280 }
 0x261   :  { %1320 = vsyncpa [#allocation3], 1 }
 0x262   :  { %1321 = vsyncpa [#allocation6], 1 }
 0x263   :  { %1322 = vsyncpa [#allocation4], 1 }

</bundles_post_ra>
